<compile_context>
chip_gen: v6e
topology: v6e:2x2x1
jax: 0.10.0
libtpu: 0.0.40
codegen_flags: <defaults>
</compile_context>

<pallas_src>
import jax
import jax.numpy as jnp
from jax.experimental import pallas as pl
from jax.experimental.pallas import tpu as pltpu


def _attn_mask_kernel(x_ref, sl_ref, w_ref, b_ref, o_ref):
    TB, S, Din = x_ref.shape
    Dout3 = w_ref.shape[1]
    Dout = Dout3 // 3

    x = x_ref[...]                                   # (TB, S, Din), native dtype
    sl = sl_ref[...]                                 # (TB, 1) int32 seq lengths
    w = w_ref[...]                                   # (Din, 3*Dout), native dtype
    b = b_ref[...].astype(jnp.float32)               # (1, 3*Dout)

    # --- fused Q|K|V projection: one dense MXU matmul over all TB*S rows
    x2 = x.reshape(TB * S, Din)
    qkv = jnp.dot(x2, w, preferred_element_type=jnp.float32)     # (TB*S, 3*Dout)
    qkv = qkv.reshape(TB, S, Dout3) + b[None, :, :]               # add biases (f32)

    q_all = qkv[:, :, :Dout]                         # (TB, S, Dout)
    k = qkv[:, :, Dout:2 * Dout]                     # (TB, S, Dout)
    v = qkv[:, :, 2 * Dout:]                         # (TB, S, Dout)

    # --- rebuild masks in-kernel from seqlen (no padded mask DMAs)
    pos = jax.lax.broadcasted_iota(jnp.int32, (TB, S), 1)        # (TB, S)
    qsel = (pos == (sl - 1)).astype(jnp.float32)     # one-hot at row sqlen-1
    kvm = pos < (sl - 1)                             # valid key rows 0..sqlen-2

    # --- query: select row sqlen-1 after projection (VPU mul + sublane reduce)
    q = jnp.sum(q_all * qsel[:, :, None], axis=1)    # (TB, Dout)

    # --- masked softmax over key positions
    scores = jnp.sum(k * q[:, None, :], axis=-1)     # (TB, S)
    masked = jnp.where(kvm, scores, -1e30)
    m = jnp.max(masked, axis=-1, keepdims=True)
    e = jnp.where(kvm, jnp.exp(masked - m), 0.0)
    denom = jnp.sum(e, axis=-1, keepdims=True)
    inv = pl.reciprocal(denom, approx=True)          # EUP slot
    p = e * inv                                      # (TB, S)

    # --- weighted value sum + tanh; seqlen<=1 rows -> 0 (torch empty-key result)
    ctx = jnp.sum(v * p[:, :, None], axis=1)         # (TB, Dout)
    ctx = jnp.where(sl > 1, ctx, 0.0)
    o_ref[...] = jnp.tanh(ctx).astype(o_ref.dtype)


def _choose_tb(B, S, Din, Dout, x_itemsize, budget_bytes=24 * 1024 * 1024):
    """Pick the batch tile: as large as the VMEM budget allows (multiple of 8),
    but keep >= 2 grid steps when B is large enough (v7x megacore sharding)."""
    if B <= 8:
        return B
    # per-row VMEM cost: double-buffered x tile + output + f32 qkv intermediates
    per_row = (2 * S * Din * x_itemsize        # x tile, double buffered
               + 2 * Dout * x_itemsize + 8     # output tile + seqlen
               + 2 * S * 3 * Dout * 4)         # qkv + elementwise intermediates
    tb = budget_bytes // max(per_row, 1)
    tb = max(8, min(tb, B, 512))
    tb = (tb // 8) * 8
    if B >= 16:
        half = ((B + 1) // 2 + 7) // 8 * 8     # ensure >= 2 grid steps
        tb = min(tb, half)
    return max(tb, 8)


def attention_with_mask(x, mask, wq, bq, wk, bk, wv, bv):
    """x: (B, S, Din), mask: (B, S) 0/1 prefix mask, wq/wk/wv: (Din, Dout)
    (i.e. the transposed torch nn.Linear weight), bq/bk/bv: (Dout,).
    Returns (B, Dout)."""
    B, S, Din = x.shape
    Dout = wq.shape[1]
    Dout3 = 3 * Dout

    # seq_len = sum(mask) as int32 (matches torch.sum(mask, dim=1, dtype=int32))
    seqlen = jnp.sum(mask, axis=1).astype(jnp.int32).reshape(B, 1)

    # Fused QKV weight / bias (weights stay in the model dtype for the MXU).
    w_qkv = jnp.concatenate([wq, wk, wv], axis=1).astype(x.dtype)     # (Din, 3*Dout)
    b_qkv = jnp.concatenate([bq, bk, bv]).reshape(1, Dout3).astype(jnp.float32)

    x_itemsize = jnp.dtype(x.dtype).itemsize
    w_itemsize = jnp.dtype(w_qkv.dtype).itemsize

    TB = _choose_tb(B, S, Din, Dout, x_itemsize)
    grid = (pl.cdiv(B, TB),)

    # Scoped-VMEM estimate for the chosen tile (raise the default limit so the
    # large tile compiles); capped at 64 MiB so it also fits a v7x TensorCore.
    vmem_est = (2 * (TB * S * Din * x_itemsize + TB * 4 + TB * Dout * x_itemsize)
                + 2 * (Din * Dout3 * w_itemsize + Dout3 * 4)
                + 2 * TB * S * Dout3 * 4)
    vmem_limit = int(min(64 * 1024 * 1024, max(2 * vmem_est, 32 * 1024 * 1024)))

    flops = (2 * B * S * Din * Dout3       # fused QKV projection
             + 2 * B * S * Dout            # query row select
             + 4 * B * S * Dout)           # scores + weighted value sum
    bytes_accessed = (x.size * x_itemsize + B * 4
                      + Din * Dout3 * w_itemsize + Dout3 * 4
                      + B * Dout * x_itemsize)
    cost = pl.CostEstimate(flops=flops,
                           transcendentals=B * (S + Dout),
                           bytes_accessed=bytes_accessed)

    return pl.pallas_call(
        _attn_mask_kernel,
        out_shape=jax.ShapeDtypeStruct((B, Dout), x.dtype),
        grid_spec=pltpu.PrefetchScalarGridSpec(
            num_scalar_prefetch=0,
            grid=grid,
            in_specs=[
                pl.BlockSpec((TB, S, Din), lambda b: (b, 0, 0)),   # x tile
                pl.BlockSpec((TB, 1), lambda b: (b, 0)),           # seqlen
                pl.BlockSpec((Din, Dout3), lambda b: (0, 0)),      # fused W (resident)
                pl.BlockSpec((1, Dout3), lambda b: (0, 0)),        # fused bias
            ],
            out_specs=pl.BlockSpec((TB, Dout), lambda b: (b, 0)),
        ),
        compiler_params=pltpu.CompilerParams(
            dimension_semantics=("parallel",),
            vmem_limit_bytes=vmem_limit,
        ),
        cost_estimate=cost,
    )(x, seqlen, w_qkv, b_qkv)


if __name__ == "__main__":
    key = jax.random.PRNGKey(0)
    B, S, Din, Dout = 2, 8, 32, 32

    kx, kq, kk, kv, kbq, kbk, kbv = jax.random.split(key, 7)
    x = jax.random.normal(kx, (B, S, Din), dtype=jnp.float32)
    wq = 0.1 * jax.random.normal(kq, (Din, Dout), dtype=jnp.float32)   # = torch Wq.weight.T
    wk = 0.1 * jax.random.normal(kk, (Din, Dout), dtype=jnp.float32)
    wv = 0.1 * jax.random.normal(kv, (Din, Dout), dtype=jnp.float32)
    bq = 0.1 * jax.random.normal(kbq, (Dout,), dtype=jnp.float32)
    bk = 0.1 * jax.random.normal(kbk, (Dout,), dtype=jnp.float32)
    bv = 0.1 * jax.random.normal(kbv, (Dout,), dtype=jnp.float32)

    # deterministic prefix masks (lengths 5 and 8, both >= 2)
    lengths = jnp.array([5, 8], dtype=jnp.int32)
    mask = (jnp.arange(S)[None, :] < lengths[:, None]).astype(jnp.float32)

    out = attention_with_mask(x, mask, wq, bq, wk, bk, wv, bv)
    out = jax.block_until_ready(out)

    # plain-JAX reference mirroring the torch per-row loop (eval mode, no dropout)
    refs = []
    for i in range(B):
        sq = int(lengths[i])
        q = x[i, sq - 1][None, :] @ wq + bq[None, :]
        k = x[i, :sq - 1] @ wk + bk[None, :]
        v = x[i, :sq - 1] @ wv + bv[None, :]
        p = jax.nn.softmax(q @ k.T, axis=-1)
        refs.append(jnp.tanh(p @ v)[0])
    ref = jnp.stack(refs, axis=0)

    assert out.shape == (B, Dout)
    assert jnp.allclose(out, ref, atol=5e-3, rtol=5e-3), "mismatch vs reference"

    print("KERNEL_OK")
</pallas_src>

<mosaic_0001>
module attributes {stable_mosaic.version = 11 : i64} {
  func.func @_attn_mask_kernel(%arg0: i32, %arg1: memref<2x8x32xf32, #tpu.memory_space<vmem>>, %arg2: memref<2x1xi32, #tpu.memory_space<vmem>>, %arg3: memref<32x96xf32, #tpu.memory_space<vmem>>, %arg4: memref<1x96xf32, #tpu.memory_space<vmem>>, %arg5: memref<2x32xf32, #tpu.memory_space<vmem>>) attributes {dimension_semantics = [#tpu.dimension_semantics<parallel>], iteration_bounds = array<i64: 1>, scalar_prefetch = 0 : i64, scratch_operands = 0 : i64, tpu.core_type = #tpu.core_type<tc>, window_params = [{transform_indices = @transform_0, window_bounds = array<i64: 2, 8, 32>}, {transform_indices = @transform_1, window_bounds = array<i64: 2, 1>}, {pipeline_mode = #tpu.pipeline_mode<synchronous>, transform_indices = @transform_2, window_bounds = array<i64: 32, 96>}, {pipeline_mode = #tpu.pipeline_mode<synchronous>, transform_indices = @transform_3, window_bounds = array<i64: 1, 96>}, {transform_indices = @transform_4, window_bounds = array<i64: 2, 32>}]} {
    %c0 = arith.constant 0 : index
    %c0_0 = arith.constant 0 : index
    %c0_1 = arith.constant 0 : index
    %0 = vector.load %arg1[%c0, %c0_0, %c0_1] : memref<2x8x32xf32, #tpu.memory_space<vmem>>, vector<2x8x32xf32>
    %c0_2 = arith.constant 0 : index
    %c0_3 = arith.constant 0 : index
    %1 = vector.load %arg2[%c0_2, %c0_3] : memref<2x1xi32, #tpu.memory_space<vmem>>, vector<2x1xi32>
    %c0_4 = arith.constant 0 : index
    %c0_5 = arith.constant 0 : index
    %2 = vector.load %arg3[%c0_4, %c0_5] : memref<32x96xf32, #tpu.memory_space<vmem>>, vector<32x96xf32>
    %c0_6 = arith.constant 0 : index
    %c0_7 = arith.constant 0 : index
    %3 = vector.load %arg4[%c0_6, %c0_7] : memref<1x96xf32, #tpu.memory_space<vmem>>, vector<1x96xf32>
    %4 = vector.shape_cast %0 : vector<2x8x32xf32> to vector<16x32xf32>
    %cst = arith.constant dense<0.000000e+00> : vector<16x96xf32>
    %5 = tpu.matmul %4, %2, %cst {dimension_numbers = #tpu.dot_dimension_numbers<[1], [0], [0], [1], [0, 0, 1, 1], [], []>} : vector<16x32xf32>, vector<32x96xf32>, vector<16x96xf32> -> vector<16x96xf32>
    %6 = vector.shape_cast %5 : vector<16x96xf32> to vector<2x8x96xf32>
    %7 = vector.shape_cast %3 : vector<1x96xf32> to vector<1x1x96xf32>
    %8 = vector.broadcast %7 : vector<1x1x96xf32> to vector<2x8x96xf32>
    %9 = arith.addf %6, %8 : vector<2x8x96xf32>
    %10 = vector.extract_strided_slice %9 {offsets = [0, 0, 0], sizes = [2, 8, 32], strides = [1, 1, 1]} : vector<2x8x96xf32> to vector<2x8x32xf32>
    %11 = vector.extract_strided_slice %9 {offsets = [0, 0, 32], sizes = [2, 8, 32], strides = [1, 1, 1]} : vector<2x8x96xf32> to vector<2x8x32xf32>
    %12 = vector.extract_strided_slice %9 {offsets = [0, 0, 64], sizes = [2, 8, 32], strides = [1, 1, 1]} : vector<2x8x96xf32> to vector<2x8x32xf32>
    %13 = tpu.iota {dimensions = array<i32: 1>} : vector<2x8xi32>
    %c1_i32 = arith.constant 1 : i32
    %14 = vector.broadcast %c1_i32 : i32 to vector<2x1xi32>
    %15 = arith.subi %1, %14 : vector<2x1xi32>
    %16 = vector.broadcast %15 : vector<2x1xi32> to vector<2x8xi32>
    %17 = arith.cmpi eq, %13, %16 : vector<2x8xi32>
    %18 = arith.extui %17 : vector<2x8xi1> to vector<2x8xi32>
    %19 = arith.sitofp %18 : vector<2x8xi32> to vector<2x8xf32>
    %c1_i32_8 = arith.constant 1 : i32
    %20 = vector.broadcast %c1_i32_8 : i32 to vector<2x1xi32>
    %21 = arith.subi %1, %20 : vector<2x1xi32>
    %22 = vector.broadcast %21 : vector<2x1xi32> to vector<2x8xi32>
    %23 = arith.cmpi slt, %13, %22 : vector<2x8xi32>
    %24 = vector.shape_cast %19 : vector<2x8xf32> to vector<2x8x1xf32>
    %25 = vector.broadcast %24 : vector<2x8x1xf32> to vector<2x8x32xf32>
    %26 = arith.mulf %10, %25 : vector<2x8x32xf32>
    %cst_9 = arith.constant dense<0.000000e+00> : vector<2x32xf32>
    %27 = vector.multi_reduction <add>, %26, %cst_9 [1] : vector<2x8x32xf32> to vector<2x32xf32>
    %28 = vector.shape_cast %27 : vector<2x32xf32> to vector<2x1x32xf32>
    %29 = vector.broadcast %28 : vector<2x1x32xf32> to vector<2x8x32xf32>
    %30 = arith.mulf %11, %29 : vector<2x8x32xf32>
    %cst_10 = arith.constant dense<0.000000e+00> : vector<2x8xf32>
    %31 = vector.multi_reduction <add>, %30, %cst_10 [2] : vector<2x8x32xf32> to vector<2x8xf32>
    %cst_11 = arith.constant -1.000000e+30 : f32
    %32 = vector.broadcast %cst_11 : f32 to vector<2x8xf32>
    %33 = arith.select %23, %31, %32 : vector<2x8xi1>, vector<2x8xf32>
    %cst_12 = arith.constant dense<0xFF800000> : vector<2xf32>
    %34 = vector.multi_reduction <maximumf>, %33, %cst_12 [1] : vector<2x8xf32> to vector<2xf32>
    %35 = vector.shape_cast %34 : vector<2xf32> to vector<2x1xf32>
    %36 = vector.broadcast %35 : vector<2x1xf32> to vector<2x8xf32>
    %37 = arith.subf %33, %36 : vector<2x8xf32>
    %38 = math.exp %37 : vector<2x8xf32>
    %cst_13 = arith.constant 0.000000e+00 : f32
    %39 = vector.broadcast %cst_13 : f32 to vector<2x8xf32>
    %40 = arith.select %23, %38, %39 : vector<2x8xi1>, vector<2x8xf32>
    %cst_14 = arith.constant dense<0.000000e+00> : vector<2xf32>
    %41 = vector.multi_reduction <add>, %40, %cst_14 [1] : vector<2x8xf32> to vector<2xf32>
    %42 = vector.shape_cast %41 : vector<2xf32> to vector<2x1xf32>
    %43 = tpu.reciprocal %42 {approx = true} : vector<2x1xf32> -> vector<2x1xf32>
    %44 = vector.broadcast %43 : vector<2x1xf32> to vector<2x8xf32>
    %45 = arith.mulf %40, %44 : vector<2x8xf32>
    %46 = vector.shape_cast %45 : vector<2x8xf32> to vector<2x8x1xf32>
    %47 = vector.broadcast %46 : vector<2x8x1xf32> to vector<2x8x32xf32>
    %48 = arith.mulf %12, %47 : vector<2x8x32xf32>
    %cst_15 = arith.constant dense<0.000000e+00> : vector<2x32xf32>
    %49 = vector.multi_reduction <add>, %48, %cst_15 [1] : vector<2x8x32xf32> to vector<2x32xf32>
    %c1_i32_16 = arith.constant 1 : i32
    %50 = vector.broadcast %c1_i32_16 : i32 to vector<2x1xi32>
    %51 = arith.cmpi sgt, %1, %50 : vector<2x1xi32>
    %cst_17 = arith.constant 0.000000e+00 : f32
    %52 = vector.shape_cast %51 : vector<2x1xi1> to vector<2x1xi1>
    %53 = vector.broadcast %52 : vector<2x1xi1> to vector<2x32xi1>
    %54 = vector.broadcast %cst_17 : f32 to vector<2x32xf32>
    %55 = arith.select %53, %49, %54 : vector<2x32xi1>, vector<2x32xf32>
    %56 = math.tanh %55 : vector<2x32xf32>
    %c0_18 = arith.constant 0 : index
    %c0_19 = arith.constant 0 : index
    %57 = vector.load %arg5[%c0_18, %c0_19] : memref<2x32xf32, #tpu.memory_space<vmem>>, vector<2x32xf32>
    tpu.vector_store %arg5[%c0_18, %c0_19], %56 {strides = array<i32>} : memref<2x32xf32, #tpu.memory_space<vmem>>, vector<2x32xf32>,
    return
  }
  func.func @transform_0(%arg0: i32) -> (i32, i32, i32) {
    %c0_i32 = arith.constant 0 : i32
    %c0_i32_0 = arith.constant 0 : i32
    %c0_i32_1 = arith.constant 0 : i32
    return %arg0, %c0_i32, %c0_i32_0 : i32, i32, i32
  }
  func.func @transform_1(%arg0: i32) -> (i32, i32) {
    %c0_i32 = arith.constant 0 : i32
    %c0_i32_0 = arith.constant 0 : i32
    return %arg0, %c0_i32 : i32, i32
  }
  func.func @transform_2(%arg0: i32) -> (i32, i32) {
    %c0_i32 = arith.constant 0 : i32
    %c0_i32_0 = arith.constant 0 : i32
    %c0_i32_1 = arith.constant 0 : i32
    return %c0_i32, %c0_i32_0 : i32, i32
  }
  func.func @transform_3(%arg0: i32) -> (i32, i32) {
    %c0_i32 = arith.constant 0 : i32
    %c0_i32_0 = arith.constant 0 : i32
    %c0_i32_1 = arith.constant 0 : i32
    return %c0_i32, %c0_i32_0 : i32, i32
  }
  func.func @transform_4(%arg0: i32) -> (i32, i32) {
    %c0_i32 = arith.constant 0 : i32
    %c0_i32_0 = arith.constant 0 : i32
    return %arg0, %c0_i32 : i32, i32
  }
}

</mosaic_0001>

<bundles_post_ra>
// kernel: tpu_custom_call.1
= control target key start
LH: loop header
LB: loop body
LE: loop exit
PB: predicated region body
PF: predicated region fallthrough
CT: control target
= control target key end

     0   :  { %9 = vsyncpa [#allocation3], 0  ;;  %s501_s0 = inlined_call_operand.hbm [shape: f32[2,8,32], index: 0, kind: input, shape index: {}]   ;;  %s502_s1 = inlined_call_operand.vmem [shape: s32[2,1], index: 1, kind: input, shape index: {}]   ;;  %s503_s2 = inlined_call_operand.hbm [shape: f32[32,96], index: 2, kind: input, shape index: {}]   ;;  %s504_s3 = inlined_call_operand.vmem [shape: f32[1,96], index: 3, kind: input, shape index: {}]   ;;  %s505_s4 = inlined_call_operand.hbm [shape: f32[2,32], index: 4, kind: output, shape index: {}]  }
   0x1   :  { %10 = vsyncpa [#allocation6], 0 }
   0x2   :  { %11 = vsyncpa [#allocation4], 0  ;;  %s404_s15 = smov [#allocation2]  }
   0x3   :  { %s17_s16 = sshll.u32 %s404_s15, 4  ;;  %s18_s16 = int_to_ptr.vmem [resolvable:$true] %s17_s16 }
   0x4   :  { %s346_s17 = scalar_lea.vmem %s18_s16, 256  ;;  %p351_p1 = scmp.lt.s32.totalorder %s18_s16, %s18_s16 }
   0x5   :  { %p347_p0 = scmp.ne.s32.totalorder %s18_s16, %s346_s17  ;;  %p352_p2 = scmp.lt.s32.totalorder %s346_s17, %s346_s17 }
   0x7   :  { %p353_p3 = por %p352_p2, %p351_p1 }
   0x9   :  { %p354_p4 = pnand %p353_p3, %p347_p0 }
   0xb   :  { %357 = shalt.err (!%p354_p4)
}
   0xc   :  { %s405_s18 = smov 128   ;;  %s406_s19 = smov 8  }
   0xd   :  { %23 = dma.hbm_to_vmem [thread:$0]  %s501_s0, 256, %s18_s16, [#allocation3], %s405_s18, %s405_s18, %s406_s19  }
   0xe   :  { %s407_s22 = smov [#allocation5]  }
   0xf   :  { %s31_s23 = sshll.u32 %s407_s22, 4  ;;  %s32_s23 = int_to_ptr.vmem [resolvable:$true] %s31_s23 }
  0x10   :  { %s366_s24 = scalar_lea.vmem %s32_s23, 512  ;;  %p371_p6 = scmp.lt.s32.totalorder %s32_s23, %s32_s23 }
  0x11   :  { %p367_p5 = scmp.ne.s32.totalorder %s32_s23, %s366_s24  ;;  %p372_p7 = scmp.lt.s32.totalorder %s366_s24, %s366_s24 }
  0x13   :  { %p373_p8 = por %p372_p7, %p371_p6 }
  0x15   :  { %p374_p9 = pnand %p373_p8, %p367_p5 }
  0x17   :  { %377 = shalt.err (!%p374_p9)
}
  0x18   :  { %37 = dma.hbm_to_vmem [thread:$0]  %s503_s2, 512, %s32_s23, [#allocation6], %s405_s18, %s405_s18, %s406_s19  }
  0x19   :  { %398 = dma.done.wait [#allocation3], 256  }
  0x1a   :  { %399 = vsyncadd [#allocation3], 4294967040 }
  0x1b   :  { %400 = dma.done.wait [#allocation6], 512  }
  0x1c   :  { %401 = vsyncadd [#allocation6], 4294966784  ;;  %v408_v0 = vmov 0   ;;  %vm54_vm0 = vcmask 261120   ;;  %v450_v1 = vld [vmem:[%s502_s1] sm:$0x3]  ;;  %v144_v9 = vlaneseq }
  0x1d   :  { %330 = vset.pattern.permute.xlu0 %v408_v0  ;;  %331 = vset.pattern.permute.xlu1 %v408_v0  ;;  %v52_v2 = vld [vmem:[#allocation5 + $0x18] sm:$0xff]  ;;  %v51_v3 = vld [vmem:[#allocation5 + $0x10] sm:$0xff]  ;;  %v301_v4 = vadd.s32 4294967295, %v450_v1  ;;  %v50_v6 = vld [vmem:[#allocation5 + $0x8] sm:$0xff]  ;;  %v409_v15 = vmov 0.0   ;;  %s411_s28 = smov 96  }
  0x1e   :  { %309 = vmatprep.subr.mxu0 %v52_v2  ;;  %v46_v5 = vld [vmem:[#allocation2] sm:$0xff]  ;;  %v49_v7 = vld [vmem:[#allocation5] sm:$0xff]  ;;  %v47_v8 = vld [vmem:[#allocation2 + $0x8] sm:$0xff]  ;;  %v455_v10 = vshrl.u32 %v144_v9, 7  ;;  %v457_v11 = vand.u32 127, %v144_v9  ;;  %vm218_vm2 = vcmask 1041409  }
  0x1f   :  { %310 = vmatpush3.msra.mxu0 %v52_v2  ;;  %317 = vmatprep.mubr.msk.f32.mxu0 %vm54_vm0, %v46_v5  ;;  %v300_v20 = vld [vmem:[%s504_s3] ss:$0 sm:$0xff]  ;;  %s410_s3 = smov 32   ;;  %vm222_vm3 = vcmask 58368   ;;  %vm266_vm5 = vcmp.gt.s32.totalorder %v450_v1, 1  ;;  %vm251_vm6 = vcmask 785920  }
  0x20   :  { %148 = vperm.xlu0 %330, %v301_v4   ;;  %311 = vmatprep.subr.mxu0 %v51_v3  ;;  %v163_v12 = vsub.s32 1, %v455_v10  ;;  %v156_v13 = vsub.s32 0, %v455_v10  ;;  %v212_v50 = vsub.s32 %v457_v11, %v455_v10  ;;  %s412_s29 = smov 64   ;;  %s413_s30 = smov [#allocation7]   ;;  %vm280_vm8 = vcmask 254976  }
  0x21   :  { %312 = vmatpush3.msra.mxu0 %v51_v3  ;;  %s288_s5 = sshll.u32 %s413_s30, 4  ;;  %s289_s5 = int_to_ptr.vmem [resolvable:$true] %s288_s5 }
  0x22   :  { %313 = vmatprep.subr.mxu0 %v50_v6  ;;  %s378_s6 = scalar_lea.vmem %s289_s5, 32  ;;  %p383_p11 = scmp.lt.s32.totalorder %s289_s5, %s289_s5 }
  0x23   :  { %314 = vmatpush3.msra.mxu0 %v50_v6  ;;  %p379_p10 = scmp.ne.s32.totalorder %s289_s5, %s378_s6  ;;  %p384_p12 = scmp.lt.s32.totalorder %s378_s6, %s378_s6 }
  0x24   :  { %315 = vmatprep.subr.mxu0 %v49_v7 }
  0x25   :  { %316 = vmatpush3.msra.mxu0 %v49_v7  ;;  %v267_v7 = vsel %vm266_vm5, 1, %v408_v0  ;;  %p385_p13 = por %p384_p12, %p383_p11 }
  0x26   :  { %318 = vmatmul.mubr.msk.f32.vlgmr.msra.gmra.mxu0 %vm54_vm0, %v47_v8 }
  0x27   :  { %p386_p0 = pnand %p385_p13, %p379_p10 }
  0x9b   :  { %v461_v14 = vpop.permute.xlu0 %148 }
  0x9c   :  { %vm150_vm1 = vcmp.eq.s32.totalorder %v457_v11, %v461_v14  ;;  %vm153_vm4 = vcmp.lt.s32.totalorder %v457_v11, %v461_v14 }
  0x9d   :  { %v302_v16 = vsel %vm150_vm1, 1.0, %v409_v15 }
  0x9e   :  { %v164_v17 = vrot.slane %v302_v16, %v163_v12  ;;  %v157_v18 = vrot.slane %v302_v16, %v156_v13 }
  0xa0   :  { %166 = vbcast.lane.b32.xlu1 %v164_v17, 256  ;;  %159 = vbcast.lane.b32.xlu0 %v157_v18, 256 }
  0xe6   :  { %v319_v19 = vpop.f32.mrf.mxu0 }
  0xe7   :  { %v472_v22 = vadd.f32 %v319_v19, %v300_v20 }
  0xe8   :  { %v127_v21 = vpop.f32.mrf.mxu0 }
  0xe9   :  { %v474_v23 = vadd.f32 %v300_v20, %v127_v21 }
 0x112   :  { %v167_v24 = vpop.permute.xlu1 %166  ;;  %v160_v25 = vpop.permute.xlu0 %159 }
 0x113   :  { %v169_v26 = vmul.f32 %v167_v24, %v472_v22  ;;  %v168_v27 = vmul.f32 %v160_v25, %v474_v23 }
 0x115   :  { %v177_v28 = vsel %vm54_vm0, %v169_v26, 0.0  ;;  %v170_v29 = vsel %vm54_vm0, %v168_v27, 0.0 }
 0x116   :  { %v178_v30 = vrot.slane %v177_v28, 4  ;;  %v171_v31 = vrot.slane %v170_v29, 4 }
 0x118   :  { %v179_v32 = vadd.f32 %v178_v30, %v177_v28  ;;  %v172_v33 = vadd.f32 %v171_v31, %v170_v29 }
 0x11a   :  { %v180_v34 = vrot.slane %v179_v32, 2  ;;  %v173_v35 = vrot.slane %v172_v33, 2 }
 0x11c   :  { %v181_v36 = vadd.f32 %v180_v34, %v179_v32  ;;  %v174_v37 = vadd.f32 %v173_v35, %v172_v33 }
 0x11e   :  { %v182_v38 = vrot.slane %v181_v36, 1  ;;  %v175_v39 = vrot.slane %v174_v37, 1 }
 0x120   :  { %v183_v40 = vadd.f32 %v182_v38, %v181_v36  ;;  %v176_v41 = vadd.f32 %v175_v39, %v174_v37 }
 0x122   :  { %188 = vrot.lane.b32.xlu0 %v183_v40, %s410_s3  ;;  %186 = vrot.lane.b32.xlu1 %v176_v41, %s410_s3 }
 0x194   :  { %v189_v42 = vpop.permute.xlu0 %188  ;;  %v187_v43 = vpop.permute.xlu1 %186 }
 0x195   :  { %v193_v44 = vmul.f32 %v189_v42, %v472_v22  ;;  %v192_v45 = vmul.f32 %v187_v43, %v474_v23 }
 0x197   :  { %198 = vrot.lane.b32.xlu0 %v193_v44, %s411_s28  ;;  %196 = vrot.lane.b32.xlu1 %v192_v45, %s411_s28 }
 0x209   :  { %v199_v46 = vpop.permute.xlu0 %198  ;;  %v197_v47 = vpop.permute.xlu1 %196 }
 0x20a   :  { %v205_v48 = vsel %vm54_vm0, %v199_v46, 0.0  ;;  %v202_v49 = vsel %vm54_vm0, %v197_v47, 0.0 }
 0x20b   :  { %206 = vadd.xlane.f32.xlu0 %v205_v48  ;;  %203 = vadd.xlane.f32.xlu1 %v202_v49 }
 0x294   :  { %v207_v51 = vpop.xlane.xlu0 %206  ;;  %v204_v52 = vpop.xlane.xlu1 %203 }
 0x295   :  { %v217_v53 = vrot.slane %v207_v51, %v212_v50  ;;  %v213_v54 = vrot.slane %v204_v52, %v212_v50 }
 0x297   :  { %v219_v55 = vsel %vm218_vm2, %v217_v53, %v213_v54 }
 0x298   :  { %v221_v56 = vsel %vm153_vm4, %v219_v55, -1e+30 }
 0x299   :  { %v223_v57 = vsel %vm222_vm3, %v221_v56, -inf }
 0x29a   :  { %224 = vmax.xlane.f32.xlu0 %v223_v57 }
 0x323   :  { %v225_v58 = vpop.xlane.xlu0 %224 }
 0x324   :  { %v226_v59 = vsub.f32 %v221_v56, %v225_v58 }
 0x326   :  { %v227_v60 = vmul.f32 1.442695, %v226_v59 }
 0x328   :  { %332 = vpow2.f32 %v227_v60 }
 0x335   :  { %v333_v61 = vpop.eup %332 }
 0x336   :  { %v229_v62 = vsel %vm153_vm4, %v333_v61, 0.0 }
 0x337   :  { %v230_v63 = vsel %vm222_vm3, %v229_v62, 0.0 }
 0x338   :  { %231 = vadd.xlane.f32.xlu1 %v230_v63 }
 0x3c1   :  { %v232_v2 = vpop.xlane.xlu1 %231 }
 0x3c2   :  { %334 = vrcp.f32 %v232_v2 }
 0x3cf   :  { %v335_v3 = vpop.eup %334 }
 0x3d0   :  { %v234_v4 = vmul.f32 %v335_v3, %v229_v62 }
 0x3d2   :  { %v245_v5 = vrot.slane %v234_v4, %v163_v12  ;;  %v238_v6 = vrot.slane %v234_v4, %v156_v13 }
 0x3d4   :  { %247 = vbcast.lane.b32.xlu1 %v245_v5, 256  ;;  %240 = vbcast.lane.b32.xlu0 %v238_v6, 256 }
 0x3d8   :  { %269 = vperm.xlu1 %331, %v267_v7  }
 0x446   :  { %v248_v8 = vpop.permute.xlu1 %247  ;;  %v241_v9 = vpop.permute.xlu0 %240 }
 0x447   :  { %v250_v11 = vmul.f32 %v248_v8, %v472_v22  ;;  %v249_v14 = vmul.f32 %v241_v9, %v474_v23 }
 0x449   :  { %v259_v15 = vsel %vm251_vm6, %v250_v11, 0.0  ;;  %v252_v16 = vsel %vm251_vm6, %v249_v14, 0.0 }
 0x44a   :  { %v260_v12 = vrot.slane %v259_v15, 4  ;;  %v253_v17 = vrot.slane %v252_v16, 4 }
 0x44c   :  { %v261_v10 = vadd.f32 %v260_v12, %v259_v15  ;;  %v254_v13 = vadd.f32 %v253_v17, %v252_v16 }
 0x44e   :  { %v262_v18 = vrot.slane %v261_v10, 2  ;;  %v255_v1 = vrot.slane %v254_v13, 2 }
 0x450   :  { %v263_v19 = vadd.f32 %v262_v18, %v261_v10  ;;  %v256_v20 = vadd.f32 %v255_v1, %v254_v13 }
 0x452   :  { %v264_v21 = vrot.slane %v263_v19, 1  ;;  %v257_v0 = vrot.slane %v256_v20, 1 }
 0x453   :  { %v270_v22 = vpop.permute.xlu1 %269 }
 0x454   :  { %v258_v24 = vadd.f32 %v257_v0, %v256_v20  ;;  %v265_v25 = vadd.f32 %v264_v21, %v263_v19  ;;  %vm271_vm7 = vcmp.eq.s32.totalorder %v270_v22, 1 }
 0x456   :  { %v274_v26 = vsel %vm218_vm2, %v265_v25, %v258_v24 }
 0x457   :  { %275 = vrot.lane.b32.xlu0 %v274_v26, %s412_s29 }
 0x4c9   :  { %v276_v23 = vpop.permute.xlu0 %275 }
 0x4ca   :  { %v278_v27 = vsel %vm271_vm7, %v276_v23, 0.0 }
 0x4cb   :  { %336 = vtanh.f32 %v278_v27 }
 0x4d8   :  { %v337_v28 = vpop.eup %336 }
 0x4d9   :  { %281 = vst.msk [vmem:[#allocation7] sm:$0x3] %vm280_vm8, %v337_v28 }
 0x4da   :  { %389 = shalt.err (!%p386_p0)
}
 0x4db   :  { %291 = dma.vmem_to_hbm [thread:$0]  %s289_s5, 32, %s505_s4, [#allocation4]  }
 0x4dc   :  { %402 = dma.done.wait [#allocation4], 32  }
 0x4dd   :  { %403 = vsyncadd [#allocation4], 4294967264 }
 0x4de   :  { %295 = vsyncpa [#allocation3], 1 }
 0x4df   :  { %296 = vsyncpa [#allocation6], 1 }
 0x4e0   :  { %297 = vsyncpa [#allocation4], 1 }

</bundles_post_ra>
